<compile_context>
chip_gen: v5e
topology: v5e:2x2
jax: 0.10.0
libtpu: 0.0.40
codegen_flags: <defaults>
</compile_context>

<pallas_src>
import numpy as np
import jax
import jax.numpy as jnp
from jax.experimental import pallas as pl
from jax.experimental.pallas import tpu as pltpu


_SQRT1_2 = 0.7071067811865476
_LN_EPS = 1e-5


def _gelu_exact(h):
    # PyTorch nn.GELU() default (exact erf formulation).
    return 0.5 * h * (1.0 + jax.lax.erf(h * _SQRT1_2))


def _layernorm_f32(x_ref, gamma_ref, beta_ref):
    x = x_ref[...].astype(jnp.float32)
    mean = jnp.mean(x, axis=-1, keepdims=True)
    xc = x - mean
    var = jnp.mean(xc * xc, axis=-1, keepdims=True)
    return xc * jax.lax.rsqrt(var + _LN_EPS) * gamma_ref[...] + beta_ref[...]


# ----------------------------------------------------------------------------
# Kernel bodies
# ----------------------------------------------------------------------------
def _resblock_resident_kernel(x_ref, gamma_ref, beta_ref, w1_ref, b1_ref,
                              w2_ref, b2_ref, o_ref):
    """Weight-resident path: full (C, C) weights live in VMEM for the whole call."""
    y = _layernorm_f32(x_ref, gamma_ref, beta_ref)
    h = jnp.dot(y.astype(w1_ref.dtype), w1_ref[...],
                preferred_element_type=jnp.float32) + b1_ref[...]
    g = _gelu_exact(h)
    proj = jnp.dot(g.astype(w2_ref.dtype), w2_ref[...],
                   preferred_element_type=jnp.float32)
    o_ref[...] = (y + b2_ref[...] + proj).astype(o_ref.dtype)


def _make_streamed_kernel(acc_in_output):
    """K-streamed path: hidden dim chunked along grid axis 1 ("arbitrary")."""
    if acc_in_output:
        # Output dtype is f32: accumulate directly into the resident o_ref block
        # (saves a tm*C*4-byte scratch — the v7x VMEM headroom).
        def kernel(x_ref, gamma_ref, beta_ref, w1_ref, b1_ref, w2_ref, b2_ref,
                   o_ref, y_ref):
            k = pl.program_id(1)

            @pl.when(k == 0)
            def _init():
                y = _layernorm_f32(x_ref, gamma_ref, beta_ref)
                o_ref[...] = y + b2_ref[...]          # residual + final bias
                y_ref[...] = y.astype(y_ref.dtype)    # MXU operand, kept across k

            h = jnp.dot(y_ref[...], w1_ref[...],
                        preferred_element_type=jnp.float32) + b1_ref[...]
            g = _gelu_exact(h)
            o_ref[...] += jnp.dot(g.astype(w2_ref.dtype), w2_ref[...],
                                  preferred_element_type=jnp.float32)
        return kernel

    def kernel(x_ref, gamma_ref, beta_ref, w1_ref, b1_ref, w2_ref, b2_ref,
               o_ref, acc_ref, y_ref):
        k = pl.program_id(1)

        @pl.when(k == 0)
        def _init():
            y = _layernorm_f32(x_ref, gamma_ref, beta_ref)
            acc_ref[...] = y + b2_ref[...]
            y_ref[...] = y.astype(y_ref.dtype)

        h = jnp.dot(y_ref[...], w1_ref[...],
                    preferred_element_type=jnp.float32) + b1_ref[...]
        g = _gelu_exact(h)
        acc_ref[...] += jnp.dot(g.astype(w2_ref.dtype), w2_ref[...],
                                preferred_element_type=jnp.float32)

        @pl.when(k == pl.num_programs(1) - 1)
        def _store():
            o_ref[...] = acc_ref[...].astype(o_ref.dtype)
    return kernel


# ----------------------------------------------------------------------------
# Wrapper: generation-aware tiling + VMEM accounting
# ----------------------------------------------------------------------------
def _round_up(n, m):
    return ((n + m - 1) // m) * m


def _tpu_generation():
    try:
        kind = jax.devices()[0].device_kind.lower()
    except Exception:
        return "unknown"
    if "v7" in kind:
        return "v7x"
    if "v6" in kind:
        return "v6e"
    if "v5" in kind and ("lite" in kind or "5e" in kind):
        return "v5e"
    if "v5" in kind:
        return "v5p"
    return "unknown"


def _generation_defaults(gen):
    # tm: token tile, tk: hidden-dim chunk, vmem_cap: scoped-VMEM ceiling we
    # are willing to request, x_bf16: carry x in bf16 (only worth it on v7x).
    if gen == "v6e":
        return dict(tm=1024, tk=512, vmem_cap=100 << 20, x_bf16=False)
    if gen == "v5e":
        return dict(tm=256, tk=256, vmem_cap=100 << 20, x_bf16=False)
    if gen == "v5p":
        return dict(tm=512, tk=512, vmem_cap=100 << 20, x_bf16=False)
    if gen == "v7x":
        return dict(tm=512, tk=256, vmem_cap=56 << 20, x_bf16=True)
    # Unknown generation: conservative config that fits a 64 MiB-VMEM part.
    return dict(tm=512, tk=256, vmem_cap=56 << 20, x_bf16=False)


def _pick_tk(C, target):
    """Largest 128-multiple divisor of C that is <= target; None if none exists."""
    best = None
    for cand in range(128, min(C, target) + 1, 128):
        if C % cand == 0:
            best = cand
    return best


def simple_res_block_pallas(x, gamma, beta, w1, b1, w2, b2,
                            *, tm=None, tk=None, compute_dtype=jnp.bfloat16,
                            vmem_cap=None, interpret=False):
    """x: [..., C].  w1/w2 are [in, out] so the kernel computes x @ W + b."""
    orig_shape = x.shape
    C = orig_shape[-1]
    x2d = x.reshape(-1, C)
    N = x2d.shape[0]
    out_dtype = x.dtype

    gen = _tpu_generation()
    dflt = _generation_defaults(gen)
    tm = dflt["tm"] if tm is None else tm
    tk_target = dflt["tk"] if tk is None else tk
    vmem_cap = dflt["vmem_cap"] if vmem_cap is None else vmem_cap

    # Token tile: clamp to the problem (bf16 scratch prefers sublane multiples
    # of 16); on v7x make sure both TensorCores get at least one token tile.
    tm = min(tm, _round_up(N, 16))
    if gen == "v7x" and N > 16 and pl.cdiv(N, tm) < 2:
        tm = _round_up(pl.cdiv(N, 2), 16)
    n_row_tiles = pl.cdiv(N, tm)

    # Cast weights only if the caller did not already provide them in the
    # compute dtype (SimpleResBlockPallas stores bf16 copies once at init).
    w1c = w1 if w1.dtype == compute_dtype else w1.astype(compute_dtype)
    w2c = w2 if w2.dtype == compute_dtype else w2.astype(compute_dtype)
    gamma2 = gamma.reshape(1, C).astype(jnp.float32)
    beta2 = beta.reshape(1, C).astype(jnp.float32)
    b1_2 = b1.reshape(1, C).astype(jnp.float32)
    b2_2 = b2.reshape(1, C).astype(jnp.float32)

    # v7x: optionally halve the x-tile DMA / VMEM footprint (LN stats stay f32).
    if dflt["x_bf16"] and C >= 1024 and x2d.dtype == jnp.float32:
        x2d = x2d.astype(jnp.bfloat16)

    xb = np.dtype(x2d.dtype).itemsize
    ob = np.dtype(out_dtype).itemsize
    wb = np.dtype(compute_dtype).itemsize

    def _vmem_limit(nbytes):
        return int(min(vmem_cap, max(32 << 20, int(nbytes * 1.25))))

    # Weight-resident fast path: both (C, C) weights resident in VMEM, streamed
    # from HBM exactly once per call regardless of the number of token tiles.
    resident_bytes = (2 * tm * C * (xb + ob)      # x / out tiles, double-buffered
                      + 2 * 2 * C * C * wb        # W1 + W2 (2 buffers each)
                      + 4 * 2 * C * 4)            # gamma / beta / b1 / b2
    tk_div = _pick_tk(C, tk_target)
    # TODO(synk): if C has no 128-multiple divisor AND the full weights exceed
    # VMEM (pathological C), this falls back to the resident path and may OOM.
    use_resident = (resident_bytes <= int(vmem_cap * 0.9)) or tk_div is None

    cost = pl.CostEstimate(
        flops=4 * N * C * C,                      # two NxCxC matmuls
        transcendentals=N * C,                    # erf
        bytes_accessed=int(N * C * (xb + ob)
                           + (1 if use_resident else n_row_tiles) * 2 * C * C * wb),
    )

    if use_resident:
        out = pl.pallas_call(
            _resblock_resident_kernel,
            out_shape=jax.ShapeDtypeStruct((N, C), out_dtype),
            grid=(n_row_tiles,),
            in_specs=[
                pl.BlockSpec((tm, C), lambda i: (i, 0)),   # x tile
                pl.BlockSpec((1, C), lambda i: (0, 0)),    # gamma
                pl.BlockSpec((1, C), lambda i: (0, 0)),    # beta
                pl.BlockSpec((C, C), lambda i: (0, 0)),    # W1 (resident)
                pl.BlockSpec((1, C), lambda i: (0, 0)),    # b1
                pl.BlockSpec((C, C), lambda i: (0, 0)),    # W2 (resident)
                pl.BlockSpec((1, C), lambda i: (0, 0)),    # b2
            ],
            out_specs=pl.BlockSpec((tm, C), lambda i: (i, 0)),
            compiler_params=pltpu.CompilerParams(
                dimension_semantics=("parallel",),
                vmem_limit_bytes=_vmem_limit(resident_bytes)),
            cost_estimate=cost,
            interpret=interpret,
        )(x2d, gamma2, beta2, w1c, b1_2, w2c, b2_2)
        return out.reshape(orig_shape)

    # K-streamed path for large C: weights in (C, tk)/(tk, C) chunks; f32
    # accumulation is output-resident when the output dtype is f32.
    tk = tk_div
    acc_in_output = out_dtype == jnp.float32
    kernel = _make_streamed_kernel(acc_in_output)

    scratch = [pltpu.VMEM((tm, C), compute_dtype)]          # normalized acts
    if not acc_in_output:
        scratch = [pltpu.VMEM((tm, C), jnp.float32)] + scratch

    streamed_bytes = (2 * tm * C * (xb + ob)                # x / out tiles
                      + 2 * 2 * C * tk * wb                 # W1 / W2 chunks
                      + 4 * 2 * C * 4                       # small params
                      + tm * C * wb                         # y scratch
                      + (0 if acc_in_output else tm * C * 4))

    out = pl.pallas_call(
        kernel,
        out_shape=jax.ShapeDtypeStruct((N, C), out_dtype),
        grid=(n_row_tiles, C // tk),
        in_specs=[
            pl.BlockSpec((tm, C), lambda i, k: (i, 0)),     # x tile
            pl.BlockSpec((1, C), lambda i, k: (0, 0)),      # gamma
            pl.BlockSpec((1, C), lambda i, k: (0, 0)),      # beta
            pl.BlockSpec((C, tk), lambda i, k: (0, k)),     # W1 column chunk
            pl.BlockSpec((1, tk), lambda i, k: (0, k)),     # b1 chunk
            pl.BlockSpec((tk, C), lambda i, k: (k, 0)),     # W2 row chunk
            pl.BlockSpec((1, C), lambda i, k: (0, 0)),      # b2
        ],
        out_specs=pl.BlockSpec((tm, C), lambda i, k: (i, 0)),
        scratch_shapes=scratch,
        compiler_params=pltpu.CompilerParams(
            dimension_semantics=("parallel", "arbitrary"),
            vmem_limit_bytes=_vmem_limit(streamed_bytes)),
        cost_estimate=cost,
        interpret=interpret,
    )(x2d, gamma2, beta2, w1c, b1_2, w2c, b2_2)
    return out.reshape(orig_shape)


# ----------------------------------------------------------------------------
# Module-style holder (mirrors the PyTorch SimpleResBlock)
# ----------------------------------------------------------------------------
class SimpleResBlockPallas:
    def __init__(self, channels, key=None, compute_dtype=jnp.bfloat16):
        self.channels = channels
        self.compute_dtype = compute_dtype
        key = key if key is not None else jax.random.PRNGKey(0)
        kg, kb, k1, k2, k3, k4 = jax.random.split(key, 6)
        # Non-trivial affine params so the LayerNorm affine path is exercised.
        self.gamma = 1.0 + 0.1 * jax.random.normal(kg, (channels,), jnp.float32)
        self.beta = 0.1 * jax.random.normal(kb, (channels,), jnp.float32)
        # Weights stored as [in, out] (torch Linear is [out, in] with x @ W^T).
        self.w1 = jax.random.normal(k1, (channels, channels), jnp.float32) * 0.02
        self.b1 = jax.random.normal(k2, (channels,), jnp.float32) * 0.02
        self.w2 = jax.random.normal(k3, (channels, channels), jnp.float32) * 0.02
        self.b2 = jax.random.normal(k4, (channels,), jnp.float32) * 0.02
        # Pre-cast the big (C, C) weights ONCE: no per-call convert pass.
        self.w1_c = self.w1.astype(compute_dtype)
        self.w2_c = self.w2.astype(compute_dtype)

    def __call__(self, x):
        return simple_res_block_pallas(x, self.gamma, self.beta,
                                       self.w1_c, self.b1, self.w2_c, self.b2,
                                       compute_dtype=self.compute_dtype)


# ----------------------------------------------------------------------------
# Pure-JAX reference (PyTorch semantics: exact-erf GELU, f32 throughout)
# ----------------------------------------------------------------------------
def _reference(m, x):
    mean = jnp.mean(x, axis=-1, keepdims=True)
    var = jnp.mean((x - mean) ** 2, axis=-1, keepdims=True)
    y = (x - mean) * jax.lax.rsqrt(var + 1e-5) * m.gamma + m.beta
    h = y @ m.w1 + m.b1
    g = 0.5 * h * (1.0 + jax.scipy.special.erf(h / jnp.sqrt(2.0)))
    return y + (g @ m.w2 + m.b2)


if __name__ == "__main__":
    key = jax.random.PRNGKey(0)
    kx, kp = jax.random.split(key)

    B, T, C = 2, 16, 32                       # small shapes: [batch, seq, channels]
    x = jax.random.normal(kx, (B, T, C), jnp.float32)

    module = SimpleResBlockPallas(channels=C, key=kp)

    out = jax.block_until_ready(module(x))
    assert out.shape == (B, T, C), out.shape

    ref = jax.block_until_ready(_reference(module, x))
    # Tolerance covers bf16 MXU inputs (GELU is exact erf, matching PyTorch).
    np.testing.assert_allclose(np.asarray(out), np.asarray(ref),
                               rtol=2e-2, atol=2e-2)

    print("KERNEL_OK")
</pallas_src>

<mosaic_0001>
module attributes {stable_mosaic.version = 11 : i64} {
  func.func @_resblock_resident_kernel(%arg0: i32, %arg1: memref<32x32xf32, #tpu.memory_space<vmem>>, %arg2: memref<1x32xf32, #tpu.memory_space<vmem>>, %arg3: memref<1x32xf32, #tpu.memory_space<vmem>>, %arg4: memref<32x32xbf16, #tpu.memory_space<vmem>>, %arg5: memref<1x32xf32, #tpu.memory_space<vmem>>, %arg6: memref<32x32xbf16, #tpu.memory_space<vmem>>, %arg7: memref<1x32xf32, #tpu.memory_space<vmem>>, %arg8: memref<32x32xf32, #tpu.memory_space<vmem>>) attributes {dimension_semantics = [#tpu.dimension_semantics<parallel>], iteration_bounds = array<i64: 1>, scalar_prefetch = 0 : i64, scratch_operands = 0 : i64, tpu.core_type = #tpu.core_type<tc>, window_params = [{transform_indices = @transform_0, window_bounds = array<i64: 32, 32>}, {pipeline_mode = #tpu.pipeline_mode<synchronous>, transform_indices = @transform_1, window_bounds = array<i64: 1, 32>}, {pipeline_mode = #tpu.pipeline_mode<synchronous>, transform_indices = @transform_2, window_bounds = array<i64: 1, 32>}, {pipeline_mode = #tpu.pipeline_mode<synchronous>, transform_indices = @transform_3, window_bounds = array<i64: 32, 32>}, {pipeline_mode = #tpu.pipeline_mode<synchronous>, transform_indices = @transform_4, window_bounds = array<i64: 1, 32>}, {pipeline_mode = #tpu.pipeline_mode<synchronous>, transform_indices = @transform_5, window_bounds = array<i64: 32, 32>}, {pipeline_mode = #tpu.pipeline_mode<synchronous>, transform_indices = @transform_6, window_bounds = array<i64: 1, 32>}, {transform_indices = @transform_7, window_bounds = array<i64: 32, 32>}]} {
    %c0 = arith.constant 0 : index
    %c0_0 = arith.constant 0 : index
    %0 = vector.load %arg1[%c0, %c0_0] : memref<32x32xf32, #tpu.memory_space<vmem>>, vector<32x32xf32>
    %cst = arith.constant dense<0.000000e+00> : vector<32xf32>
    %1 = vector.multi_reduction <add>, %0, %cst [1] : vector<32x32xf32> to vector<32xf32>
    %2 = vector.shape_cast %1 : vector<32xf32> to vector<32x1xf32>
    %cst_1 = arith.constant 3.200000e+01 : f32
    %3 = vector.broadcast %cst_1 : f32 to vector<32x1xf32>
    %4 = arith.divf %2, %3 : vector<32x1xf32>
    %5 = vector.broadcast %4 : vector<32x1xf32> to vector<32x32xf32>
    %6 = arith.subf %0, %5 : vector<32x32xf32>
    %7 = arith.mulf %6, %6 : vector<32x32xf32>
    %cst_2 = arith.constant dense<0.000000e+00> : vector<32xf32>
    %8 = vector.multi_reduction <add>, %7, %cst_2 [1] : vector<32x32xf32> to vector<32xf32>
    %9 = vector.shape_cast %8 : vector<32xf32> to vector<32x1xf32>
    %cst_3 = arith.constant 3.200000e+01 : f32
    %10 = vector.broadcast %cst_3 : f32 to vector<32x1xf32>
    %11 = arith.divf %9, %10 : vector<32x1xf32>
    %cst_4 = arith.constant 9.99999974E-6 : f32
    %12 = vector.broadcast %cst_4 : f32 to vector<32x1xf32>
    %13 = arith.addf %11, %12 : vector<32x1xf32>
    %14 = math.rsqrt %13 : vector<32x1xf32>
    %15 = vector.broadcast %14 : vector<32x1xf32> to vector<32x32xf32>
    %16 = arith.mulf %6, %15 : vector<32x32xf32>
    %c0_5 = arith.constant 0 : index
    %c0_6 = arith.constant 0 : index
    %17 = vector.load %arg2[%c0_5, %c0_6] : memref<1x32xf32, #tpu.memory_space<vmem>>, vector<1x32xf32>
    %18 = vector.broadcast %17 : vector<1x32xf32> to vector<32x32xf32>
    %19 = arith.mulf %16, %18 : vector<32x32xf32>
    %c0_7 = arith.constant 0 : index
    %c0_8 = arith.constant 0 : index
    %20 = vector.load %arg3[%c0_7, %c0_8] : memref<1x32xf32, #tpu.memory_space<vmem>>, vector<1x32xf32>
    %21 = vector.broadcast %20 : vector<1x32xf32> to vector<32x32xf32>
    %22 = arith.addf %19, %21 : vector<32x32xf32>
    %23 = arith.truncf %22 : vector<32x32xf32> to vector<32x32xbf16>
    %c0_9 = arith.constant 0 : index
    %c0_10 = arith.constant 0 : index
    %24 = vector.load %arg4[%c0_9, %c0_10] : memref<32x32xbf16, #tpu.memory_space<vmem>>, vector<32x32xbf16>
    %cst_11 = arith.constant dense<0.000000e+00> : vector<32x32xf32>
    %25 = tpu.matmul %23, %24, %cst_11 {dimension_numbers = #tpu.dot_dimension_numbers<[1], [0], [0], [1], [0, 0, 1, 1], [], []>} : vector<32x32xbf16>, vector<32x32xbf16>, vector<32x32xf32> -> vector<32x32xf32>
    %c0_12 = arith.constant 0 : index
    %c0_13 = arith.constant 0 : index
    %26 = vector.load %arg5[%c0_12, %c0_13] : memref<1x32xf32, #tpu.memory_space<vmem>>, vector<1x32xf32>
    %27 = vector.broadcast %26 : vector<1x32xf32> to vector<32x32xf32>
    %28 = arith.addf %25, %27 : vector<32x32xf32>
    %cst_14 = arith.constant 5.000000e-01 : f32
    %29 = vector.broadcast %cst_14 : f32 to vector<32x32xf32>
    %30 = arith.mulf %29, %28 : vector<32x32xf32>
    %cst_15 = arith.constant 0.707106769 : f32
    %31 = vector.broadcast %cst_15 : f32 to vector<32x32xf32>
    %32 = arith.mulf %28, %31 : vector<32x32xf32>
    %33 = math.erf %32 : vector<32x32xf32>
    %cst_16 = arith.constant 1.000000e+00 : f32
    %34 = vector.broadcast %cst_16 : f32 to vector<32x32xf32>
    %35 = arith.addf %34, %33 : vector<32x32xf32>
    %36 = arith.mulf %30, %35 : vector<32x32xf32>
    %37 = arith.truncf %36 : vector<32x32xf32> to vector<32x32xbf16>
    %c0_17 = arith.constant 0 : index
    %c0_18 = arith.constant 0 : index
    %38 = vector.load %arg6[%c0_17, %c0_18] : memref<32x32xbf16, #tpu.memory_space<vmem>>, vector<32x32xbf16>
    %cst_19 = arith.constant dense<0.000000e+00> : vector<32x32xf32>
    %39 = tpu.matmul %37, %38, %cst_19 {dimension_numbers = #tpu.dot_dimension_numbers<[1], [0], [0], [1], [0, 0, 1, 1], [], []>} : vector<32x32xbf16>, vector<32x32xbf16>, vector<32x32xf32> -> vector<32x32xf32>
    %c0_20 = arith.constant 0 : index
    %c0_21 = arith.constant 0 : index
    %40 = vector.load %arg7[%c0_20, %c0_21] : memref<1x32xf32, #tpu.memory_space<vmem>>, vector<1x32xf32>
    %41 = vector.broadcast %40 : vector<1x32xf32> to vector<32x32xf32>
    %42 = arith.addf %22, %41 : vector<32x32xf32>
    %43 = arith.addf %42, %39 : vector<32x32xf32>
    %c0_22 = arith.constant 0 : index
    %c0_23 = arith.constant 0 : index
    %44 = vector.load %arg8[%c0_22, %c0_23] : memref<32x32xf32, #tpu.memory_space<vmem>>, vector<32x32xf32>
    tpu.vector_store %arg8[%c0_22, %c0_23], %43 {strides = array<i32>} : memref<32x32xf32, #tpu.memory_space<vmem>>, vector<32x32xf32>,
    return
  }
  func.func @transform_0(%arg0: i32) -> (i32, i32) {
    %c0_i32 = arith.constant 0 : i32
    %c0_i32_0 = arith.constant 0 : i32
    return %arg0, %c0_i32 : i32, i32
  }
  func.func @transform_1(%arg0: i32) -> (i32, i32) {
    %c0_i32 = arith.constant 0 : i32
    %c0_i32_0 = arith.constant 0 : i32
    %c0_i32_1 = arith.constant 0 : i32
    return %c0_i32, %c0_i32_0 : i32, i32
  }
  func.func @transform_2(%arg0: i32) -> (i32, i32) {
    %c0_i32 = arith.constant 0 : i32
    %c0_i32_0 = arith.constant 0 : i32
    %c0_i32_1 = arith.constant 0 : i32
    return %c0_i32, %c0_i32_0 : i32, i32
  }
  func.func @transform_3(%arg0: i32) -> (i32, i32) {
    %c0_i32 = arith.constant 0 : i32
    %c0_i32_0 = arith.constant 0 : i32
    %c0_i32_1 = arith.constant 0 : i32
    return %c0_i32, %c0_i32_0 : i32, i32
  }
  func.func @transform_4(%arg0: i32) -> (i32, i32) {
    %c0_i32 = arith.constant 0 : i32
    %c0_i32_0 = arith.constant 0 : i32
    %c0_i32_1 = arith.constant 0 : i32
    return %c0_i32, %c0_i32_0 : i32, i32
  }
  func.func @transform_5(%arg0: i32) -> (i32, i32) {
    %c0_i32 = arith.constant 0 : i32
    %c0_i32_0 = arith.constant 0 : i32
    %c0_i32_1 = arith.constant 0 : i32
    return %c0_i32, %c0_i32_0 : i32, i32
  }
  func.func @transform_6(%arg0: i32) -> (i32, i32) {
    %c0_i32 = arith.constant 0 : i32
    %c0_i32_0 = arith.constant 0 : i32
    %c0_i32_1 = arith.constant 0 : i32
    return %c0_i32, %c0_i32_0 : i32, i32
  }
  func.func @transform_7(%arg0: i32) -> (i32, i32) {
    %c0_i32 = arith.constant 0 : i32
    %c0_i32_0 = arith.constant 0 : i32
    return %arg0, %c0_i32 : i32, i32
  }
}

</mosaic_0001>

<bundles_post_ra>
// kernel: tpu_custom_call.1
= control target key start
LH: loop header
LB: loop body
LE: loop exit
PB: predicated region body
PF: predicated region fallthrough
CT: control target
= control target key end

     0   :  { %12 = vsyncpa [#allocation3], 0  ;;  %s937_s0 = inlined_call_operand.hbm [shape: f32[32,32], index: 0, kind: input, shape index: {}]   ;;  %s938_s1 = inlined_call_operand.hbm [shape: f32[1,32], index: 1, kind: input, shape index: {}]   ;;  %s939_s2 = inlined_call_operand.vmem [shape: f32[1,32], index: 2, kind: input, shape index: {}]   ;;  %s940_s3 = inlined_call_operand.hbm [shape: bf16[32,32], index: 3, kind: input, shape index: {}]   ;;  %s941_s4 = inlined_call_operand.vmem [shape: f32[1,32], index: 4, kind: input, shape index: {}]   ;;  %s942_s5 = inlined_call_operand.hbm [shape: bf16[32,32], index: 5, kind: input, shape index: {}]   ;;  %s943_s6 = inlined_call_operand.vmem [shape: f32[1,32], index: 6, kind: input, shape index: {}]   ;;  %s944_s7 = inlined_call_operand.hbm [shape: f32[32,32], index: 7, kind: output, shape index: {}]  }
   0x1   :  { %13 = vsyncpa [#allocation6], 0 }
   0x2   :  { %14 = vsyncpa [#allocation9], 0  ;;  %s34_s26 = sshll.u32 %s938_s1, 4  ;;  %s35_s26 = int_to_ptr.hbm [resolvable:$true] %s34_s26 }
   0x3   :  { %15 = vsyncpa [#allocation4], 0  ;;  %s700_s27 = smov [#allocation5]   ;;  %s20_s8 = sshll.u32 %s937_s0, 4  ;;  %s21_s8 = int_to_ptr.hbm [resolvable:$true] %s20_s8 }
   0x4   :  { %s36_s28 = sshll.u32 %s700_s27, 4  ;;  %s701_s9 = smov [#allocation2]   ;;  %s37_s28 = int_to_ptr.vmem [resolvable:$true] %s36_s28 }
   0x5   :  { %39 = dma.hbm_to_vmem [thread:$0]  %s35_s26, 16, %s37_s28, [#allocation6]  }
   0x6   :  { %s22_s10 = sshll.u32 %s701_s9, 4  ;;  %s702_s11 = smov 128   ;;  %s23_s10 = int_to_ptr.vmem [resolvable:$true] %s22_s10 }
   0x7   :  { %s703_s12 = smov 8   ;;  %s46_s14 = sshll.u32 %s940_s3, 4  ;;  %s47_s14 = int_to_ptr.hbm [resolvable:$true] %s46_s14 }
   0x8   :  { %28 = dma.hbm_to_vmem [thread:$0]  %s21_s8, 512, %s23_s10, [#allocation3], %s702_s11, %s702_s11, %s703_s12  }
   0x9   :  { %s704_s15 = smov [#allocation7]   ;;  %s61_s18 = sshll.u32 %s942_s5, 4  ;;  %s62_s18 = int_to_ptr.hbm [resolvable:$true] %s61_s18 }
   0xa   :  { %s48_s16 = sshll.u32 %s704_s15, 4  ;;  %s705_s19 = smov 64   ;;  %s49_s16 = int_to_ptr.vmem [resolvable:$true] %s48_s16 }
   0xb   :  { %s706_s20 = smov 4   ;;  %s707_s21 = smov [#allocation8]  }
   0xc   :  { %54 = dma.hbm_to_vmem [thread:$0]  %s47_s14, 256, %s49_s16, [#allocation6], %s705_s19, %s705_s19, %s706_s20  }
   0xd   :  { %s63_s22 = sshll.u32 %s707_s21, 4  ;;  %s64_s22 = int_to_ptr.vmem [resolvable:$true] %s63_s22 }
   0xe   :  { %69 = dma.hbm_to_vmem [thread:$0]  %s62_s18, 256, %s64_s22, [#allocation9], %s705_s19, %s705_s19, %s706_s20  }
   0xf   :  { %692 = dma.done.wait [#allocation3], 512  }
  0x10   :  { %693 = vsyncadd [#allocation3], 4294966784 }
  0x11   :  { %694 = dma.done.wait [#allocation6], 272  }
  0x12   :  { %695 = vsyncadd [#allocation6], 4294967024 }
  0x13   :  { %696 = dma.done.wait [#allocation9], 256  }
  0x14   :  { %697 = vsyncadd [#allocation9], 4294967040  ;;  %vm93_vm0 = vcmask 261120   ;;  %v91_v0 = vld [vmem:[#allocation2 + $0x10] sm:$0xff]  ;;  %v89_v1 = vld [vmem:[#allocation2] sm:$0xff]  ;;  %v708_v8 = vmov 32.0  }
  0x15   :  { %v100_v2 = vsel %vm93_vm0, %v91_v0, 0.0  ;;  %v94_v3 = vsel %vm93_vm0, %v89_v1, 0.0  ;;  %v92_v4 = vld [vmem:[#allocation2 + $0x18] sm:$0xff]  ;;  %v90_v5 = vld [vmem:[#allocation2 + $0x8] sm:$0xff]  ;;  %554 = vrcp.f32 %v708_v8  ;;  %s709_s25 = smov [#allocation10]   ;;  %s493_s28 = sshll.u32 %s944_s7, 4  ;;  %s494_s28 = int_to_ptr.hbm [resolvable:$true] %s493_s28 }
  0x16   :  { %101 = vadd.xlane.f32.xlu0 %v100_v2  ;;  %95 = vadd.xlane.f32.xlu1 %v94_v3  ;;  %v103_v6 = vsel %vm93_vm0, %v92_v4, 0.0  ;;  %v97_v7 = vsel %vm93_vm0, %v90_v5, 0.0  ;;  %v533_v35 = vld [vmem:[#allocation7 + $0x8] sm:$0xff]  ;;  %v532_v40 = vld [vmem:[#allocation7] sm:$0xff] }
  0x17   :  { %239 = vmatpush.bf16.msra.mxu0 %v533_v35  ;;  %536 = vmatpush.bf16.msra.mxu2 %v533_v35 }
  0x1b   :  { %v555_v9 = vpop.eup %554  ;;  %240 = vmatpush.bf16.msra.mxu0 %v532_v40  ;;  %537 = vmatpush.bf16.msra.mxu2 %v532_v40 }
  0x1c   :  { %v107_v10 = vmul.f32 32.0, %v555_v9  ;;  %vm111_vm1 = vweird.f32 %v555_v9 }
  0x1e   :  { %104 = vadd.xlane.f32.xlu0 %v103_v6  ;;  %98 = vadd.xlane.f32.xlu1 %v97_v7  ;;  %v108_v11 = vsub.f32 1.0, %v107_v10  ;;  %v550_v10 = vld [vmem:[#allocation5] ss:$0 sm:$0xff] }
  0x20   :  { %v109_v12 = vmul.f32 %v555_v9, %v108_v11 }
  0x22   :  { %v110_v13 = vadd.f32 %v555_v9, %v109_v12 }
  0x24   :  { %v112_v14 = vsel %vm111_vm1, %v555_v9, %v110_v13 }
  0x89   :  { %v102_v15 = vpop.xlane.xlu0 %101  ;;  %v96_v16 = vpop.xlane.xlu1 %95 }
  0x8a   :  { %v115_v17 = vmul.f32 %v112_v14, %v102_v15  ;;  %v113_v18 = vmul.f32 %v112_v14, %v96_v16 }
  0x8c   :  { %v769_v19 = vsub.f32 %v91_v0, %v115_v17  ;;  %v771_v20 = vsub.f32 %v89_v1, %v113_v18  ;;  %v551_v17 = vld [vmem:[%s939_s2] ss:$0 sm:$0xff] }
  0x8e   :  { %v123_v21 = vmul.f32 %v769_v19, %v769_v19  ;;  %v121_v22 = vmul.f32 %v771_v20, %v771_v20 }
  0x90   :  { %v131_v23 = vsel %vm93_vm0, %v123_v21, 0.0  ;;  %v125_v24 = vsel %vm93_vm0, %v121_v22, 0.0 }
  0x91   :  { %132 = vadd.xlane.f32.xlu2 %v131_v23  ;;  %v105_v25 = vpop.xlane.xlu0 %104  ;;  %126 = vadd.xlane.f32.xlu0 %v125_v24  ;;  %v99_v26 = vpop.xlane.xlu1 %98 }
  0x92   :  { %v116_v27 = vmul.f32 %v112_v14, %v105_v25  ;;  %v114_v28 = vmul.f32 %v112_v14, %v99_v26 }
  0x94   :  { %v779_v29 = vsub.f32 %v92_v4, %v116_v27  ;;  %v781_v30 = vsub.f32 %v90_v5, %v114_v28 }
  0x96   :  { %v124_v31 = vmul.f32 %v779_v29, %v779_v29  ;;  %v122_v32 = vmul.f32 %v781_v30, %v781_v30 }
  0x98   :  { %v134_v33 = vsel %vm93_vm0, %v124_v31, 0.0  ;;  %v128_v34 = vsel %vm93_vm0, %v122_v32, 0.0 }
  0x99   :  { %135 = vadd.xlane.f32.xlu2 %v134_v33  ;;  %129 = vadd.xlane.f32.xlu1 %v128_v34 }
 0x104   :  { %v133_v36 = vpop.xlane.xlu2 %132  ;;  %v127_v37 = vpop.xlane.xlu0 %126 }
 0x105   :  { %v139_v38 = vmul.f32 %v133_v36, %v112_v14  ;;  %v137_v39 = vmul.f32 %v127_v37, %v112_v14 }
 0x107   :  { %v143_v41 = vadd.f32 1e-05, %v139_v38  ;;  %v141_v42 = vadd.f32 1e-05, %v137_v39 }
 0x109   :  { %556 = vrsqrt.f32 %v143_v41  ;;  %vm151_vm3 = vweird.f32 %v141_v42  ;;  %vm171_vm5 = vweird.f32 %v143_v41 }
 0x10a   :  { %558 = vrsqrt.f32 %v141_v42 }
 0x10c   :  { %v136_v43 = vpop.xlane.xlu2 %135  ;;  %v130_v44 = vpop.xlane.xlu1 %129 }
 0x10d   :  { %v140_v45 = vmul.f32 %v136_v43, %v112_v14  ;;  %v138_v46 = vmul.f32 %v130_v44, %v112_v14 }
 0x10f   :  { %v557_v47 = vpop.eup %556  ;;  %v144_v48 = vadd.f32 1e-05, %v140_v45  ;;  %v142_v49 = vadd.f32 1e-05, %v138_v46 }
 0x110   :  { %v559_v50 = vpop.eup %558  ;;  %v166_v51 = vmul.f32 %v557_v47, %v143_v41  ;;  %vm172_vm2 = vweird.f32 %v557_v47 }
 0x111   :  { %v146_v52 = vmul.f32 %v559_v50, %v141_v42  ;;  %560 = vrsqrt.f32 %v144_v48  ;;  %vm152_vm4 = vweird.f32 %v559_v50  ;;  %vm173_vm6 = vmor %vm171_vm5, %vm172_vm2  ;;  %vm161_vm9 = vweird.f32 %v142_v49 }
 0x112   :  { %v167_v53 = vmul.f32 %v557_v47, %v166_v51  ;;  %562 = vrsqrt.f32 %v142_v49  ;;  %vm153_vm7 = vmor %vm151_vm3, %vm152_vm4  ;;  %vm181_vm11 = vweird.f32 %v144_v48 }
 0x113   :  { %v147_v54 = vmul.f32 %v559_v50, %v146_v52 }
 0x114   :  { %v168_v55 = vmul.f32 0.5, %v167_v53 }
 0x115   :  { %v148_v56 = vmul.f32 0.5, %v147_v54 }
 0x116   :  { %v169_v57 = vsub.f32 1.5, %v168_v55 }
 0x117   :  { %v561_v58 = vpop.eup %560  ;;  %v149_v59 = vsub.f32 1.5, %v148_v56 }
 0x118   :  { %v563_v60 = vpop.eup %562  ;;  %v170_v61 = vmul.f32 %v557_v47, %v169_v57  ;;  %v176_v62 = vmul.f32 %v561_v58, %v144_v48  ;;  %vm182_vm8 = vweird.f32 %v561_v58 }
 0x119   :  { %v150_v63 = vmul.f32 %v559_v50, %v149_v59  ;;  %v156_v0 = vmul.f32 %v563_v60, %v142_v49  ;;  %vm162_vm10 = vweird.f32 %v563_v60  ;;  %vm183_vm12 = vmor %vm181_vm11, %vm182_vm8 }
 0x11a   :  { %v177_v1 = vmul.f32 %v561_v58, %v176_v62  ;;  %v174_v3 = vsel %vm173_vm6, %v557_v47, %v170_v61  ;;  %vm163_vm13 = vmor %vm161_vm9, %vm162_vm10 }
 0x11b   :  { %v157_v2 = vmul.f32 %v563_v60, %v156_v0  ;;  %v154_v5 = vsel %vm153_vm7, %v559_v50, %v150_v63  ;;  %v187_v8 = vmul.f32 %v174_v3, %v769_v19 }
 0x11c   :  { %v178_v4 = vmul.f32 0.5, %v177_v1  ;;  %v185_v11 = vmul.f32 %v154_v5, %v771_v20 }
 0x11d   :  { %v158_v6 = vmul.f32 0.5, %v157_v2  ;;  %v195_v18 = vmul.f32 %v550_v10, %v187_v8 }
 0x11e   :  { %v179_v7 = vsub.f32 1.5, %v178_v4  ;;  %v193_v21 = vmul.f32 %v550_v10, %v185_v11 }
 0x11f   :  { %v159_v9 = vsub.f32 1.5, %v158_v6  ;;  %v796_v20 = vadd.f32 %v551_v17, %v195_v18 }
 0x120   :  { %v180_v12 = vmul.f32 %v561_v58, %v179_v7  ;;  %v800_v25 = vadd.f32 %v551_v17, %v193_v21 }
 0x121   :  { %v160_v13 = vmul.f32 %v563_v60, %v159_v9 }
 0x122   :  { %v184_v14 = vsel %vm183_vm12, %v561_v58, %v180_v12 }
 0x123   :  { %v188_v15 = vmul.f32 %v184_v14, %v779_v29  ;;  %v164_v16 = vsel %vm163_vm13, %v563_v60, %v160_v13  ;;  %v552_v29 = vld [vmem:[%s941_s4] ss:$0 sm:$0xff] }
 0x124   :  { %v186_v19 = vmul.f32 %v164_v16, %v781_v30 }
 0x125   :  { %v196_v22 = vmul.f32 %v550_v10, %v188_v15 }
 0x126   :  { %v194_v23 = vmul.f32 %v550_v10, %v186_v19 }
 0x127   :  { %v798_v24 = vadd.f32 %v551_v17, %v196_v22 }
 0x128   :  { %v802_v26 = vadd.f32 %v551_v17, %v194_v23 }
 0x129   :  { %v206_v27 = vpack.c.bf16 %v798_v24, %v796_v20 }
 0x12a   :  { %v205_v28 = vpack.c.bf16 %v802_v26, %v800_v25 }
 0x12b   :  { %517 = vmatmul.msk.bf16.vlgmr.msra.gmra.mxu2 %vm93_vm0, %v206_v27 }
 0x12c   :  { %516 = vmatmul.msk.bf16.vlgmr.msra.gmra.mxu0 %vm93_vm0, %v205_v28 }
 0x1a9   :  { %v242_v30 = vpop.f32.mrf.mxu0 }
 0x1aa   :  { %v813_v31 = vadd.f32 %v552_v29, %v242_v30 }
 0x1ac   :  { %v816_v32 = vmul.f32 0.70710677, %v813_v31 }
 0x1ae   :  { %v260_v33 = vmul.f32 %v816_v32, %v816_v32  ;;  %v247_v34 = vpop.f32.mrf.mxu2 }
 0x1af   :  { %v820_v35 = vadd.f32 %v552_v29, %v247_v34 }
 0x1b0   :  { %v822_v36 = vmin.f32 %v260_v33, 16.0 }
 0x1b1   :  { %v825_v37 = vmul.f32 0.70710677, %v820_v35  ;;  %v244_v38 = vpop.f32.mrf.mxu0 }
 0x1b2   :  { %v262_v39 = vmul.f32 2.1237322e-06, %v822_v36  ;;  %v273_v40 = vmul.f32 3.8918573e-05, %v822_v36  ;;  %v829_v41 = vadd.f32 %v552_v29, %v244_v38 }
 0x1b3   :  { %v340_v42 = vmul.f32 %v825_v37, %v825_v37 }
 0x1b4   :  { %v274_v43 = vadd.f32 0.001143296, %v273_v40  ;;  %v836_v45 = vmul.f32 0.70710677, %v829_v41  ;;  %v263_v46 = vadd.f32 0.00028619796, %v262_v39 }
 0x1b5   :  { %v833_v44 = vmin.f32 %v340_v42, 16.0 }
 0x1b6   :  { %v275_v47 = vmul.f32 %v274_v43, %v822_v36  ;;  %v249_v48 = vpop.f32.mrf.mxu2  ;;  %v300_v50 = vmul.f32 %v836_v45, %v836_v45  ;;  %v264_v55 = vmul.f32 %v263_v46, %v822_v36  ;;  %v535_v43 = vld [vmem:[#allocation8 + $0x8] sm:$0xff] }
 0x1b7   :  { %v353_v49 = vmul.f32 3.8918573e-05, %v833_v44  ;;  %v842_v51 = vadd.f32 %v552_v29, %v249_v48  ;;  %v342_v63 = vmul.f32 2.1237322e-06, %v833_v44  ;;  %458 = vmatpush.bf16.msra.mxu1 %v535_v43  ;;  %538 = vmatpush.bf16.msra.mxu3 %v535_v43 }
 0x1b8   :  { %v276_v52 = vadd.f32 0.014752088, %v275_v47  ;;  %v844_v54 = vmin.f32 %v300_v50, 16.0  ;;  %v265_v2 = vadd.f32 0.0036580483, %v264_v55 }
 0x1b9   :  { %v354_v53 = vadd.f32 0.001143296, %v353_v49  ;;  %v849_v57 = vmul.f32 0.70710677, %v842_v51  ;;  %v343_v9 = vadd.f32 0.00028619796, %v342_v63 }
 0x1ba   :  { %v277_v56 = vmul.f32 %v276_v52, %v822_v36  ;;  %v302_v59 = vmul.f32 2.1237322e-06, %v844_v54  ;;  %v313_v60 = vmul.f32 3.8918573e-05, %v844_v54  ;;  %v266_v12 = vmul.f32 %v265_v2, %v822_v36 }
 0x1bb   :  { %v355_v58 = vmul.f32 %v354_v53, %v833_v44  ;;  %v380_v62 = vmul.f32 %v849_v57, %v849_v57  ;;  %v344_v19 = vmul.f32 %v343_v9, %v833_v44 }
 0x1bc   :  { %v278_v61 = vadd.f32 0.112945676, %v277_v56  ;;  %v303_v1 = vadd.f32 0.00028619796, %v302_v59  ;;  %v314_v4 = vadd.f32 0.001143296, %v313_v60 }
 0x1bd   :  { %v356_v0 = vadd.f32 0.014752088, %v355_v58  ;;  %v860_v8 = vmin.f32 %v380_v62, 16.0  ;;  %v267_v23 = vadd.f32 0.05243302, %v266_v12  ;;  %v534_v60 = vld [vmem:[#allocation8] sm:$0xff] }
 0x1be   :  { %v279_v3 = vmul.f32 %v278_v61, %v822_v36  ;;  %v315_v7 = vmul.f32 %v314_v4, %v844_v54  ;;  %v304_v11 = vmul.f32 %v303_v1, %v844_v54  ;;  %v345_v33 = vadd.f32 0.0036580483, %v344_v19  ;;  %459 = vmatpush.bf16.msra.mxu1 %v534_v60  ;;  %539 = vmatpush.bf16.msra.mxu3 %v534_v60 }
 0x1bf   :  { %v357_v5 = vmul.f32 %v356_v0, %v833_v44  ;;  %v382_v18 = vmul.f32 2.1237322e-06, %v860_v8  ;;  %v393_v27 = vmul.f32 3.8918573e-05, %v860_v8  ;;  %v268_v39 = vmul.f32 %v267_v23, %v822_v36 }
 0x1c0   :  { %v280_v6 = vadd.f32 0.4994258, %v279_v3  ;;  %v316_v14 = vadd.f32 0.014752088, %v315_v7  ;;  %v305_v22 = vadd.f32 0.0036580483, %v304_v11  ;;  %v346_v50 = vmul.f32 %v345_v33, %v833_v44 }
 0x1c1   :  { %v358_v10 = vadd.f32 0.112945676, %v357_v5  ;;  %v383_v30 = vadd.f32 0.00028619796, %v382_v18  ;;  %v394_v42 = vadd.f32 0.001143296, %v393_v27 }
 0x1c2   :  { %v281_v13 = vmul.f32 %v280_v6, %v822_v36  ;;  %v317_v17 = vmul.f32 %v316_v14, %v844_v54  ;;  %v306_v38 = vmul.f32 %v305_v22, %v844_v54  ;;  %v269_v55 = vadd.f32 0.18741608, %v268_v39 }
 0x1c3   :  { %v359_v15 = vmul.f32 %v358_v10, %v833_v44  ;;  %v384_v48 = vmul.f32 %v383_v30, %v860_v8  ;;  %v395_v53 = vmul.f32 %v394_v42, %v860_v8  ;;  %v347_v1 = vadd.f32 0.05243302, %v346_v50 }
 0x1c4   :  { %v282_v16 = vadd.f32 1.0, %v281_v13  ;;  %v318_v29 = vadd.f32 0.112945676, %v317_v17  ;;  %v307_v52 = vadd.f32 0.05243302, %v306_v38  ;;  %v270_v4 = vmul.f32 %v269_v55, %v822_v36 }
 0x1c5   :  { %v360_v21 = vadd.f32 0.4994258, %v359_v15  ;;  %v396_v59 = vadd.f32 0.014752088, %v395_v53  ;;  %v385_v62 = vadd.f32 0.0036580483, %v384_v48  ;;  %v348_v12 = vmul.f32 %v347_v1, %v833_v44 }
 0x1c6   :  { %564 = vrcp.f32 %v282_v16  ;;  %v319_v40 = vmul.f32 %v318_v29, %v844_v54  ;;  %v308_v2 = vmul.f32 %v307_v52, %v844_v54  ;;  %v294_v7 = vand.u32 2147483648, %v282_v16 }
 0x1c7   :  { %v361_v28 = vmul.f32 %v360_v21, %v833_v44  ;;  %v397_v3 = vmul.f32 %v396_v59, %v860_v8  ;;  %vm288_vm15 = vweird.f32 %v282_v16  ;;  %v292_v9 = vand.u32 2147483647, %v282_v16 }
 0x1c8   :  { %v320_v47 = vadd.f32 0.4994258, %v319_v40  ;;  %v386_v10 = vmul.f32 %v385_v62, %v860_v8  ;;  %v309_v13 = vadd.f32 0.18741608, %v308_v2  ;;  %v271_v14 = vadd.f32 1.1283791, %v270_v4 }
 0x1c9   :  { %v871_v34 = vadd.f32 1.0, %v361_v28  ;;  %v398_v11 = vadd.f32 0.112945676, %v397_v3  ;;  %v295_v18 = vor.u32 1.1754944e-38, %v294_v7  ;;  %vm293_vm2 = vcmp.eq.f32.partialorder %v292_v9, 8.507059e+37 }
 0x1ca   :  { %v321_v56 = vmul.f32 %v320_v47, %v844_v54  ;;  %v387_v21 = vadd.f32 0.05243302, %v386_v10  ;;  %v272_v28 = vmul.f32 %v271_v14, %v816_v32  ;;  %v349_v29 = vadd.f32 0.18741608, %v348_v12 }
 0x1cb   :  { %566 = vrcp.f32 %v871_v34  ;;  %v399_v17 = vmul.f32 %v398_v11, %v860_v8  ;;  %vm368_vm5 = vweird.f32 %v871_v34  ;;  %v372_v53 = vand.u32 2147483647, %v871_v34 }
 0x1cc   :  { %v565_v46 = vpop.eup %564  ;;  %v881_v61 = vadd.f32 1.0, %v321_v56  ;;  %v388_v42 = vmul.f32 %v387_v21, %v860_v8  ;;  %v350_v48 = vmul.f32 %v349_v29, %v833_v44  ;;  %v253_v7 = vmul.f32 0.5, %v829_v41 }
 0x1cd   :  { %v284_v49 = vmul.f32 %v565_v46, %v282_v16  ;;  %vm289_vm14 = vweird.f32 %v565_v46  ;;  %v400_v22 = vadd.f32 0.4994258, %v399_v17  ;;  %v310_v16 = vmul.f32 %v309_v13, %v844_v54 }
 0x1ce   :  { %568 = vrcp.f32 %v881_v61  ;;  %vm290_vm1 = vmor %vm288_vm15, %vm289_vm14  ;;  %v334_v40 = vand.u32 2147483648, %v881_v61  ;;  %v332_v54 = vand.u32 2147483647, %v881_v61  ;;  %vm328_vm6 = vweird.f32 %v881_v61 }
 0x1cf   :  { %v285_v58 = vsub.f32 1.0, %v284_v49  ;;  %v401_v33 = vmul.f32 %v400_v22, %v860_v8  ;;  %v374_v49 = vand.u32 2147483648, %v871_v34  ;;  %v389_v56 = vadd.f32 0.18741608, %v388_v42 }
 0x1d0   :  { %v335_v55 = vor.u32 1.1754944e-38, %v334_v40  ;;  %vm333_vm9 = vcmp.eq.f32.partialorder %v332_v54, 8.507059e+37  ;;  %v351_v59 = vadd.f32 1.1283791, %v350_v48  ;;  %vm373_vm10 = vcmp.eq.f32.partialorder %v372_v53, 8.507059e+37 }
 0x1d1   :  { %v883_v63 = vpop.eup %566  ;;  %v286_v0 = vmul.f32 %v565_v46, %v285_v58  ;;  %v402_v43 = vadd.f32 1.0, %v401_v33 }
 0x1d2   :  { %v364_v5 = vmul.f32 %v883_v63, %v871_v34  ;;  %vm369_vm4 = vweird.f32 %v883_v63 }
 0x1d3   :  { %v287_v6 = vadd.f32 %v565_v46, %v286_v0  ;;  %570 = vrcp.f32 %v402_v43  ;;  %vm370_vm8 = vmor %vm368_vm5, %vm369_vm4  ;;  %v375_v0 = vor.u32 1.1754944e-38, %v374_v49  ;;  %v414_v13 = vand.u32 2147483648, %v402_v43 }
 0x1d4   :  { %v365_v36 = vsub.f32 1.0, %v364_v5  ;;  %v569_v19 = vpop.eup %568  ;;  %vm408_vm12 = vweird.f32 %v402_v43 }
 0x1d5   :  { %v291_v15 = vsel %vm290_vm1, %v565_v46, %v287_v6  ;;  %v324_v27 = vmul.f32 %v569_v19, %v881_v61  ;;  %v311_v46 = vadd.f32 1.1283791, %v310_v16  ;;  %vm329_vm3 = vweird.f32 %v569_v19 }
 0x1d6   :  { %v296_v23 = vsel %vm293_vm2, %v295_v18, %v291_v15  ;;  %v366_v30 = vmul.f32 %v883_v63, %v365_v36  ;;  %vm330_vm7 = vmor %vm328_vm6, %vm329_vm3  ;;  %v390_v61 = vmul.f32 %v389_v56, %v860_v8  ;;  %v252_v6 = vmul.f32 0.5, %v813_v31 }
 0x1d7   :  { %v325_v38 = vsub.f32 1.0, %v324_v27  ;;  %v297_v39 = vmul.f32 %v296_v23, %v272_v28  ;;  %v312_v44 = vmul.f32 %v311_v46, %v836_v45  ;;  %v352_v45 = vmul.f32 %v351_v59, %v825_v37 }
 0x1d8   :  { %v367_v32 = vadd.f32 %v883_v63, %v366_v30  ;;  %v391_v12 = vadd.f32 1.1283791, %v390_v61  ;;  %v412_v36 = vand.u32 2147483647, %v402_v43  ;;  %v415_v18 = vor.u32 1.1754944e-38, %v414_v13 }
 0x1d9   :  { %v326_v47 = vmul.f32 %v569_v19, %v325_v38  ;;  %v518_v52 = vclamps-f32 %v297_v39, 1.0  ;;  %v571_v2 = vpop.eup %570  ;;  %v254_v16 = vmul.f32 0.5, %v820_v35  ;;  %v255_v27 = vmul.f32 0.5, %v842_v51 }
 0x1da   :  { %v371_v60 = vsel %vm370_vm8, %v883_v63, %v367_v32  ;;  %v404_v5 = vmul.f32 %v571_v2, %v402_v43  ;;  %vm409_vm11 = vweird.f32 %v571_v2  ;;  %v392_v37 = vmul.f32 %v391_v12, %v849_v57  ;;  %v553_v57 = vld [vmem:[%s943_s6] ss:$0 sm:$0xff]  ;;  %s491_s6 = sshll.u32 %s709_s25, 4  ;;  %s492_s6 = int_to_ptr.vmem [resolvable:$true] %s491_s6 }
 0x1db   :  { %v327_v50 = vadd.f32 %v569_v19, %v326_v47  ;;  %v420_v3 = vadd.f32 1.0, %v518_v52  ;;  %v376_v34 = vsel %vm373_vm10, %v375_v0, %v371_v60  ;;  %vm410_vm13 = vmor %vm408_vm12, %vm409_vm11  ;;  %vm413_vm14 = vcmp.eq.f32.partialorder %v412_v36, 8.507059e+37 }
 0x1dc   :  { %v405_v10 = vsub.f32 1.0, %v404_v5  ;;  %v377_v11 = vmul.f32 %v376_v34, %v352_v45  ;;  %v475_v38 = vadd.f32 %v553_v57, %v800_v25  ;;  %v476_v35 = vadd.f32 %v553_v57, %v802_v26 }
 0x1dd   :  { %v331_v58 = vsel %vm330_vm7, %v569_v19, %v327_v50  ;;  %v424_v63 = vmul.f32 %v420_v3, %v252_v6  ;;  %v477_v43 = vadd.f32 %v553_v57, %v796_v20  ;;  %v478_v25 = vadd.f32 %v553_v57, %v798_v24 }
 0x1de   :  { %v336_v62 = vsel %vm333_vm9, %v335_v55, %v331_v58  ;;  %v406_v15 = vmul.f32 %v571_v2, %v405_v10  ;;  %v520_v31 = vclamps-f32 %v377_v11, 1.0 }
 0x1df   :  { %v337_v1 = vmul.f32 %v336_v62, %v312_v44 }
 0x1e0   :  { %v407_v8 = vadd.f32 %v571_v2, %v406_v15  ;;  %v422_v22 = vadd.f32 1.0, %v520_v31 }
 0x1e1   :  { %v519_v4 = vclamps-f32 %v337_v1, 1.0 }
 0x1e2   :  { %v411_v19 = vsel %vm410_vm13, %v571_v2, %v407_v8  ;;  %v426_v29 = vmul.f32 %v422_v22, %v254_v16 }
 0x1e3   :  { %v421_v9 = vadd.f32 1.0, %v519_v4  ;;  %v416_v41 = vsel %vm413_vm14, %v415_v18, %v411_v19 }
 0x1e4   :  { %v417_v21 = vmul.f32 %v416_v41, %v392_v37 }
 0x1e5   :  { %v425_v14 = vmul.f32 %v421_v9, %v253_v7 }
 0x1e6   :  { %v521_v23 = vclamps-f32 %v417_v21, 1.0 }
 0x1e7   :  { %v428_v17 = vpack.c.bf16 %v425_v14, %v424_v63 }
 0x1e8   :  { %v423_v28 = vadd.f32 1.0, %v521_v23 }
 0x1e9   :  { %530 = vmatmul.msk.bf16.vlgmr.msra.gmra.mxu1 %vm93_vm0, %v428_v17 }
 0x1ea   :  { %v427_v30 = vmul.f32 %v423_v28, %v255_v27 }
 0x1ec   :  { %v429_v33 = vpack.c.bf16 %v427_v30, %v426_v29 }
 0x1ee   :  { %531 = vmatmul.msk.bf16.vlgmr.msra.gmra.mxu3 %vm93_vm0, %v429_v33 }
 0x266   :  { %v461_v39 = vpop.f32.mrf.mxu1 }
 0x267   :  { %v479_v40 = vadd.f32 %v475_v38, %v461_v39 }
 0x269   :  { %483 = vst.msk [vmem:[#allocation10] sm:$0xff] %vm93_vm0, %v479_v40 }
 0x26e   :  { %v463_v42 = vpop.f32.mrf.mxu1 }
 0x26f   :  { %v480_v51 = vadd.f32 %v476_v35, %v463_v42 }
 0x271   :  { %484 = vst.msk [vmem:[#allocation10 + $0x8] sm:$0xff] %vm93_vm0, %v480_v51  ;;  %v466_v46 = vpop.f32.mrf.mxu3 }
 0x272   :  { %v481_v47 = vadd.f32 %v477_v43, %v466_v46 }
 0x274   :  { %485 = vst.msk [vmem:[#allocation10 + $0x10] sm:$0xff] %vm93_vm0, %v481_v47 }
 0x279   :  { %v468_v54 = vpop.f32.mrf.mxu3 }
 0x27a   :  { %v482_v26 = vadd.f32 %v478_v25, %v468_v54 }
 0x27c   :  { %486 = vst.msk [vmem:[#allocation10 + $0x18] sm:$0xff] %vm93_vm0, %v482_v26 }
 0x27d   :  { %499 = dma.vmem_to_hbm [thread:$0]  %s492_s6, 512, %s494_s28, [#allocation4], %s702_s11, %s702_s11, %s703_s12  }
 0x27e   :  { %698 = dma.done.wait [#allocation4], 512  }
 0x27f   :  { %699 = vsyncadd [#allocation4], 4294966784 }
 0x280   :  { %504 = vsyncpa [#allocation3], 1 }
 0x281   :  { %505 = vsyncpa [#allocation6], 1 }
 0x282   :  { %506 = vsyncpa [#allocation9], 1 }
 0x283   :  { %507 = vsyncpa [#allocation4], 1 }

</bundles_post_ra>
